<compile_context>
chip_gen: v7x
topology: tpu7x:2x2x1
jax: 0.10.0
libtpu: 0.0.40
codegen_flags: <defaults>
</compile_context>

<pallas_src>
import math

import jax
import jax.numpy as jnp
from jax.experimental import pallas as pl
from jax.experimental.pallas import tpu as pltpu

LANE = 128


# ----------------------------------------------------------------------------- kernel
def _modified_gcn_kernel(state_ref, act_ref, m_ref, bias_ref, alpha_ref, out_ref):
    """One fused block of Bt graphs.

    state_ref : (Bt*rows, width)   lane-dense view of the graphs' state features
    act_ref   : (Bt*rows, AF)      per-graph flattened actions, repeated `rows` times
    m_ref     : (AF, width)        tile(W_eff, (n_a, 1)) -> folds the n_a reduction
    bias_ref  : (1, width)         bias, column-tiled to the lane-dense width
    alpha_ref : (1,) in SMEM       PReLU slope
    """
    # Single MXU matmul produces the broadcast row for every output row of every graph.
    r = jnp.dot(act_ref[...].astype(jnp.float32), m_ref[...],
                preferred_element_type=jnp.float32)                     # (Bt*rows, width)
    out = state_ref[...].astype(jnp.float32) + r + bias_ref[...]
    alpha = alpha_ref[0]
    # PReLU as a select feeding a single VPU multiply.
    out_ref[...] = (out * jnp.where(out >= 0.0, jnp.float32(1.0), alpha)).astype(out_ref.dtype)


# ----------------------------------------------------------------------------- layout helpers
def _lane_dense_layout(n_s, out_ft):
    """Pick a lane-dense (rows, width) view of an (n_s, out_ft) contiguous slab.

    Returns (rows, width, reps): `reps` = how many times W/bias columns are tiled so the
    per-graph broadcast row lines up with the reshaped state.
    """
    if out_ft % LANE == 0:
        return n_s, out_ft, 1                       # already lane-dense
    if LANE % out_ft == 0 and (n_s * out_ft) % LANE == 0:
        return (n_s * out_ft) // LANE, LANE, LANE // out_ft
    return n_s, out_ft, 1                           # fallback: natural layout


def prepare_params(w_state, bias, n_s, n_a, out_ft):
    """Hoisted out of the per-call path — call once, reuse across forward calls.

    w_state: (out_ft, in_state_ft) PyTorch fc_state.weight.  bias: (out_ft,).
    Returns (m_eff, bias_eff, layout) where m_eff already folds the n_a-sum and the
    lane-dense column tiling.
    """
    in_ft = w_state.shape[1]
    rows, width, reps = _lane_dense_layout(n_s, out_ft)
    # Keep the lane-dense view and the column tiling provably in sync.
    assert rows * width == n_s * out_ft, (rows, width, n_s, out_ft)
    assert width == reps * out_ft, (width, reps, out_ft)

    w_eff = jnp.tile(w_state.T, (1, reps)) if reps > 1 else w_state.T       # (in_ft, width)
    m_eff = jnp.tile(w_eff, (n_a, 1))                                       # (n_a*in_ft, width)
    bias_eff = jnp.tile(bias.reshape(1, out_ft), (1, reps))                 # (1, width)
    return m_eff, bias_eff, (rows, width)


def _choose_bt(b, rows, per_graph_bytes, target_bytes):
    """Graphs per grid step: big enough to amortize per-step overhead, (8,128)-aligned."""
    bt = max(1, int(target_bytes) // max(1, int(per_graph_bytes)))
    if bt >= b:
        return b                                    # single step, full-extent blocks
    align = 8 // math.gcd(rows, 8)                  # make Bt*rows a multiple of 8
    bt = max(align, (bt // align) * align)
    return min(bt, b)


# ----------------------------------------------------------------------------- entry points
def modified_gcn_batched(state_features, action_features, m_eff, bias_eff, alpha, layout,
                         *, target_block_bytes=4 << 20, vmem_limit_bytes=64 << 20):
    """B independent graph instances in one pallas_call.

    state_features: (B, n_s, out_ft), action_features: (B, n_a, in_state_ft).
    m_eff/bias_eff/layout come from prepare_params (computed once, reused per call).
    """
    b, n_s, out_ft = state_features.shape
    _, n_a, in_ft = action_features.shape
    rows, width = layout
    af = n_a * in_ft
    dtype = state_features.dtype

    # Lane-dense flat views (contiguous reshapes only).
    state_flat = state_features.reshape(b * rows, width)
    # Repeat each graph's flattened actions over its `rows` output rows so the per-graph
    # row broadcast is folded directly into the block matmul (no in-kernel reshape).
    act_flat = action_features.reshape(b, af)
    act_exp = jnp.broadcast_to(act_flat[:, None, :], (b, rows, af)).reshape(b * rows, af)

    per_graph_bytes = (rows * width * dtype.itemsize * 2            # state in + out
                       + rows * af * action_features.dtype.itemsize)  # expanded actions
    bt = _choose_bt(b, rows, per_graph_bytes, target_block_bytes)
    pb = pl.cdiv(b, bt) * bt
    if pb != b:                                      # pad batch to a whole number of blocks
        pad_rows = (pb - b) * rows
        state_flat = jnp.pad(state_flat, ((0, pad_rows), (0, 0)))
        act_exp = jnp.pad(act_exp, ((0, pad_rows), (0, 0)))
    steps = pb // bt
    block_rows = bt * rows

    out = pl.pallas_call(
        _modified_gcn_kernel,
        out_shape=jax.ShapeDtypeStruct((pb * rows, width), dtype),
        grid=(steps,),
        in_specs=[
            pl.BlockSpec((block_rows, width), lambda i: (i, 0)),   # state slab (lane-dense)
            pl.BlockSpec((block_rows, af), lambda i: (i, 0)),      # expanded actions
            pl.BlockSpec((af, width), lambda i: (0, 0)),           # M (shared, resident)
            pl.BlockSpec((1, width), lambda i: (0, 0)),            # bias (shared)
            pl.BlockSpec(memory_space=pltpu.SMEM),                 # PReLU alpha (scalar)
        ],
        out_specs=pl.BlockSpec((block_rows, width), lambda i: (i, 0)),
        compiler_params=pltpu.CompilerParams(
            # Only shard across TensorCores when there are >= 2 substantial steps.
            dimension_semantics=("parallel",) if steps >= 2 else ("arbitrary",),
            vmem_limit_bytes=vmem_limit_bytes,
        ),
    )(state_flat, act_exp, m_eff, bias_eff, alpha)

    return out[: b * rows].reshape(b, n_s, out_ft)


def modified_gcn(state_features, action_features, w_state, bias, alpha):
    """Single graph instance, routed through the batched kernel.

    NOTE: at this size plain XLA fusion would be at least as fast (pallas_call launch
    overhead dominates ~1.5 KiB of data); kept for signature parity with the module.
    """
    n_s, out_ft = state_features.shape
    n_a, _ = action_features.shape
    m_eff, bias_eff, layout = prepare_params(w_state, bias, n_s, n_a, out_ft)
    out = modified_gcn_batched(state_features[None], action_features[None],
                               m_eff, bias_eff, alpha, layout)
    return out[0]


# ----------------------------------------------------------------------------- init + reference
def init_params(key, in_state_ft, in_action_ft, out_ft):
    """Deterministic synthetic init mirroring the module's __init__."""
    k1, k2 = jax.random.split(key)
    gain = 1.414
    std_state = gain * (2.0 / (in_state_ft + out_ft)) ** 0.5     # xavier_normal_
    w_state = std_state * jax.random.normal(k1, (out_ft, in_state_ft), jnp.float32)
    std_action = gain * (2.0 / (in_action_ft + out_ft)) ** 0.5   # fc_action: init'd, unused
    w_action = std_action * jax.random.normal(k2, (out_ft, in_action_ft), jnp.float32)
    bias = jnp.zeros((out_ft,), jnp.float32)                     # bias.data.fill_(0.0)
    alpha = jnp.full((1,), 0.25, jnp.float32)                    # PReLU default init
    return w_state, w_action, bias, alpha


def reference_forward(state_features, action_features, w_state, bias, alpha):
    action_fts = action_features @ w_state.T
    out = state_features + jnp.sum(action_fts, axis=0) + bias
    return jnp.where(out >= 0.0, out, alpha[0] * out)


if __name__ == "__main__":
    # Small shapes consistent with the forward pass.
    in_state_ft, in_action_ft, out_ft = 16, 12, 32
    n_state, n_action = 8, 8
    batch = 64            # fused into one grid step by default
    batch_ragged = 60     # forces multi-step grid + batch padding path

    key = jax.random.PRNGKey(0)
    kw, ks, ka, kadj, kbs, kba, kcs, kca = jax.random.split(key, 8)

    w_state, w_action, bias, alpha = init_params(kw, in_state_ft, in_action_ft, out_ft)

    state_features = jax.random.normal(ks, (n_state, out_ft), jnp.float32)
    action_features = jax.random.normal(ka, (n_action, in_state_ft), jnp.float32)
    # Adjacency is an (unused) forward argument; built here for shape fidelity only.
    state_action_adjacency = (
        jax.random.uniform(kadj, (n_state, n_action)) > 0.5
    ).astype(jnp.float32)

    # --- single-instance path ---------------------------------------------------
    out = modified_gcn(state_features, action_features, w_state, bias, alpha)
    out = jax.block_until_ready(out)
    ref = reference_forward(state_features, action_features, w_state, bias, alpha)
    assert out.shape == (n_state, out_ft)
    assert jnp.allclose(out, ref, atol=1e-5, rtol=1e-5), "single-instance mismatch"

    # --- batched path: params prepared ONCE, reused across calls ------------------
    m_eff, bias_eff, layout = prepare_params(w_state, bias, n_state, n_action, out_ft)

    state_b = jax.random.normal(kbs, (batch, n_state, out_ft), jnp.float32)
    action_b = jax.random.normal(kba, (batch, n_action, in_state_ft), jnp.float32)
    out_b = modified_gcn_batched(state_b, action_b, m_eff, bias_eff, alpha, layout)
    out_b = jax.block_until_ready(out_b)
    ref_b = jax.vmap(lambda s, a: reference_forward(s, a, w_state, bias, alpha))(state_b, action_b)
    assert out_b.shape == (batch, n_state, out_ft)
    assert jnp.allclose(out_b, ref_b, atol=1e-5, rtol=1e-5), "batched mismatch"

    # --- batched path with a forced multi-step grid (exercises padding + 'parallel') ---
    state_c = jax.random.normal(kcs, (batch_ragged, n_state, out_ft), jnp.float32)
    action_c = jax.random.normal(kca, (batch_ragged, n_action, in_state_ft), jnp.float32)
    out_c = modified_gcn_batched(state_c, action_c, m_eff, bias_eff, alpha, layout,
                                 target_block_bytes=48 * 1024)
    out_c = jax.block_until_ready(out_c)
    ref_c = jax.vmap(lambda s, a: reference_forward(s, a, w_state, bias, alpha))(state_c, action_c)
    assert out_c.shape == (batch_ragged, n_state, out_ft)
    assert jnp.allclose(out_c, ref_c, atol=1e-5, rtol=1e-5), "multi-step batched mismatch"

    print("KERNEL_OK")
</pallas_src>

<mosaic_0001>
module attributes {stable_mosaic.version = 11 : i64} {
  func.func @_modified_gcn_kernel(%arg0: i32, %arg1: memref<2x128xf32, #tpu.memory_space<vmem>>, %arg2: memref<2x128xf32, #tpu.memory_space<vmem>>, %arg3: memref<128x128xf32, #tpu.memory_space<vmem>>, %arg4: memref<1x128xf32, #tpu.memory_space<vmem>>, %arg5: memref<1xf32, #tpu.memory_space<smem>>, %arg6: memref<2x128xf32, #tpu.memory_space<vmem>>) attributes {dimension_semantics = [#tpu.dimension_semantics<arbitrary>], iteration_bounds = array<i64: 1>, scalar_prefetch = 0 : i64, scratch_operands = 0 : i64, tpu.core_type = #tpu.core_type<tc>, window_params = [{transform_indices = @transform_0, window_bounds = array<i64: 2, 128>}, {transform_indices = @transform_1, window_bounds = array<i64: 2, 128>}, {pipeline_mode = #tpu.pipeline_mode<synchronous>, transform_indices = @transform_2, window_bounds = array<i64: 128, 128>}, {pipeline_mode = #tpu.pipeline_mode<synchronous>, transform_indices = @transform_3, window_bounds = array<i64: 1, 128>}, {transform_indices = @transform_4, window_bounds = array<i64: 1>}, {transform_indices = @transform_5, window_bounds = array<i64: 2, 128>}]} {
    %c0 = arith.constant 0 : index
    %c0_0 = arith.constant 0 : index
    %0 = vector.load %arg2[%c0, %c0_0] : memref<2x128xf32, #tpu.memory_space<vmem>>, vector<2x128xf32>
    %c0_1 = arith.constant 0 : index
    %c0_2 = arith.constant 0 : index
    %1 = vector.load %arg3[%c0_1, %c0_2] : memref<128x128xf32, #tpu.memory_space<vmem>>, vector<128x128xf32>
    %cst = arith.constant dense<0.000000e+00> : vector<2x128xf32>
    %2 = tpu.matmul %0, %1, %cst {dimension_numbers = #tpu.dot_dimension_numbers<[1], [0], [0], [1], [0, 0, 1, 1], [], []>} : vector<2x128xf32>, vector<128x128xf32>, vector<2x128xf32> -> vector<2x128xf32>
    %c0_3 = arith.constant 0 : index
    %c0_4 = arith.constant 0 : index
    %3 = vector.load %arg1[%c0_3, %c0_4] : memref<2x128xf32, #tpu.memory_space<vmem>>, vector<2x128xf32>
    %4 = arith.addf %3, %2 : vector<2x128xf32>
    %c0_5 = arith.constant 0 : index
    %c0_6 = arith.constant 0 : index
    %5 = vector.load %arg4[%c0_5, %c0_6] : memref<1x128xf32, #tpu.memory_space<vmem>>, vector<1x128xf32>
    %6 = vector.broadcast %5 : vector<1x128xf32> to vector<2x128xf32>
    %7 = arith.addf %4, %6 : vector<2x128xf32>
    %c0_7 = arith.constant 0 : index
    %8 = memref.load %arg5[%c0_7] : memref<1xf32, #tpu.memory_space<smem>>
    %cst_8 = arith.constant 0.000000e+00 : f32
    %9 = vector.broadcast %cst_8 : f32 to vector<2x128xf32>
    %10 = arith.cmpf oge, %7, %9 : vector<2x128xf32>
    %cst_9 = arith.constant 1.000000e+00 : f32
    %11 = vector.broadcast %cst_9 : f32 to vector<2x128xf32>
    %12 = vector.broadcast %8 : f32 to vector<2x128xf32>
    %13 = arith.select %10, %11, %12 : vector<2x128xi1>, vector<2x128xf32>
    %14 = arith.mulf %7, %13 : vector<2x128xf32>
    %c0_10 = arith.constant 0 : index
    %c0_11 = arith.constant 0 : index
    %15 = vector.load %arg6[%c0_10, %c0_11] : memref<2x128xf32, #tpu.memory_space<vmem>>, vector<2x128xf32>
    tpu.vector_store %arg6[%c0_10, %c0_11], %14 {strides = array<i32>} : memref<2x128xf32, #tpu.memory_space<vmem>>, vector<2x128xf32>,
    return
  }
  func.func @transform_0(%arg0: i32) -> (i32, i32) {
    %c0_i32 = arith.constant 0 : i32
    %c0_i32_0 = arith.constant 0 : i32
    return %arg0, %c0_i32 : i32, i32
  }
  func.func @transform_1(%arg0: i32) -> (i32, i32) {
    %c0_i32 = arith.constant 0 : i32
    %c0_i32_0 = arith.constant 0 : i32
    return %arg0, %c0_i32 : i32, i32
  }
  func.func @transform_2(%arg0: i32) -> (i32, i32) {
    %c0_i32 = arith.constant 0 : i32
    %c0_i32_0 = arith.constant 0 : i32
    %c0_i32_1 = arith.constant 0 : i32
    return %c0_i32, %c0_i32_0 : i32, i32
  }
  func.func @transform_3(%arg0: i32) -> (i32, i32) {
    %c0_i32 = arith.constant 0 : i32
    %c0_i32_0 = arith.constant 0 : i32
    %c0_i32_1 = arith.constant 0 : i32
    return %c0_i32, %c0_i32_0 : i32, i32
  }
  func.func @transform_4(%arg0: i32) -> i32 {
    %c0_i32 = arith.constant 0 : i32
    %c0_i32_0 = arith.constant 0 : i32
    return %c0_i32 : i32
  }
  func.func @transform_5(%arg0: i32) -> (i32, i32) {
    %c0_i32 = arith.constant 0 : i32
    %c0_i32_0 = arith.constant 0 : i32
    return %arg0, %c0_i32 : i32, i32
  }
}

</mosaic_0001>

<bundles_post_ra>
// kernel: tpu_custom_call.1
= control target key start
LH: loop header
LB: loop body
LE: loop exit
PB: predicated region body
PF: predicated region fallthrough
CT: control target
= control target key end

     0   :  { %11 = vsyncpa [#allocation4], 0  ;;  %s499_s0 = inlined_call_operand.hbm [shape: f32[2,128], index: 0, kind: input, shape index: {}]   ;;  %s500_s1 = inlined_call_operand.hbm [shape: f32[2,128], index: 1, kind: input, shape index: {}]   ;;  %s501_s2 = inlined_call_operand.hbm [shape: f32[128,128], index: 2, kind: input, shape index: {}]   ;;  %s502_s3 = inlined_call_operand.hbm [shape: f32[1,128], index: 3, kind: input, shape index: {}]   ;;  %s503_s4 = inlined_call_operand.<no memory space> [shape: f32[1], index: 4, kind: input, shape index: {}]   ;;  %s504_s5 = inlined_call_operand.hbm [shape: f32[2,128], index: 5, kind: output, shape index: {}]  }
   0x1   :  { %12 = vsyncpa [#allocation7], 0 }
   0x2   :  { %13 = vsyncpa [#allocation10], 0 }
   0x3   :  { %14 = vsyncpa [#allocation5], 0  ;;  %s396_s18 = smov [#allocation6]   ;;  %s397_s20 = smov [#allocation3]  }
   0x4   :  { %s31_s19 = sshll.u32 %s396_s18, 4  ;;  %s21_s21 = sshll.u32 %s397_s20, 4  ;;  %s32_s19 = int_to_ptr.vmem [resolvable:$true] %s31_s19  ;;  %s22_s21 = int_to_ptr.vmem [resolvable:$true] %s21_s21 }
   0x5   :  { %s278_s24 = scalar_lea.hbm %s500_s1, 32 }
   0x6   :  { %p279_p0 = scmp.ne.s32.totalorder %s500_s1, %s278_s24  ;;  %p282_p1 = scmp.lt.u32.totalorder %s278_s24, %s500_s1 }
   0x8   :  { %p284_p2 = pnand %p282_p1, %p279_p0 }
   0xa   :  { %287 = shalt.err (!%p284_p2)
}
   0xb   :  { %s288_s29 = scalar_lea.vmem %s32_s19, 32  ;;  %p293_p4 = scmp.lt.s32.totalorder %s32_s19, %s32_s19 }
   0xc   :  { %p289_p3 = scmp.ne.s32.totalorder %s32_s19, %s288_s29  ;;  %p294_p5 = scmp.lt.s32.totalorder %s288_s29, %s288_s29 }
   0xe   :  { %p295_p6 = por %p294_p5, %p293_p4 }
  0x10   :  { %p296_p7 = pnand %p295_p6, %p289_p3 }
  0x12   :  { %299 = shalt.err (!%p296_p7)
}
  0x13   :  { %34 = dma.hbm_to_vmem [thread:$0]  %s500_s1, 32, %s32_s19, [#allocation7]  }
  0x14   :  { %s300_s9 = scalar_lea.hbm %s499_s0, 32 }
  0x15   :  { %p301_p8 = scmp.ne.s32.totalorder %s499_s0, %s300_s9  ;;  %p304_p9 = scmp.lt.u32.totalorder %s300_s9, %s499_s0 }
  0x17   :  { %p306_p10 = pnand %p304_p9, %p301_p8 }
  0x19   :  { %309 = shalt.err (!%p306_p10)
}
  0x1a   :  { %s310_s14 = scalar_lea.vmem %s22_s21, 32  ;;  %p315_p12 = scmp.lt.s32.totalorder %s22_s21, %s22_s21 }
  0x1b   :  { %p311_p11 = scmp.ne.s32.totalorder %s22_s21, %s310_s14  ;;  %p316_p13 = scmp.lt.s32.totalorder %s310_s14, %s310_s14 }
  0x1d   :  { %p317_p0 = por %p316_p13, %p315_p12 }
  0x1f   :  { %p318_p1 = pnand %p317_p0, %p311_p11 }
  0x21   :  { %321 = shalt.err (!%p318_p1)
}
  0x22   :  { %24 = dma.hbm_to_vmem [thread:$0]  %s499_s0, 32, %s22_s21, [#allocation4]  }
  0x23   :  { %s398_s16 = smov [#allocation8]   ;;  %s322_s20 = scalar_lea.hbm %s501_s2, 2048 }
  0x24   :  { %s40_s17 = sshll.u32 %s398_s16, 4  ;;  %p323_p2 = scmp.ne.s32.totalorder %s501_s2, %s322_s20  ;;  %s41_s17 = int_to_ptr.vmem [resolvable:$true] %s40_s17 }
  0x25   :  { %p326_p3 = scmp.lt.u32.totalorder %s322_s20, %s501_s2 }
  0x27   :  { %p328_p4 = pnand %p326_p3, %p323_p2 }
  0x29   :  { %331 = shalt.err (!%p328_p4)
}
  0x2a   :  { %s332_s26 = scalar_lea.vmem %s41_s17, 2048  ;;  %p337_p6 = scmp.lt.s32.totalorder %s41_s17, %s41_s17 }
  0x2b   :  { %p333_p5 = scmp.ne.s32.totalorder %s41_s17, %s332_s26  ;;  %p338_p7 = scmp.lt.s32.totalorder %s332_s26, %s332_s26 }
  0x2d   :  { %p339_p8 = por %p338_p7, %p337_p6 }
  0x2f   :  { %p340_p9 = pnand %p339_p8, %p333_p5 }
  0x31   :  { %343 = shalt.err (!%p340_p9)
}
  0x32   :  { %s399_s0 = smov 128   ;;  %s400_s21 = smov 8  }
  0x33   :  { %46 = dma.hbm_to_vmem [thread:$0]  %s501_s2, 2048, %s41_s17, [#allocation7], %s399_s0, %s399_s0, %s400_s21  }
  0x34   :  { %s401_s29 = smov [#allocation9]   ;;  %s344_s8 = scalar_lea.hbm %s502_s3, 16 }
  0x35   :  { %s53_s30 = sshll.u32 %s401_s29, 4  ;;  %p345_p10 = scmp.ne.s32.totalorder %s502_s3, %s344_s8  ;;  %s54_s30 = int_to_ptr.vmem [resolvable:$true] %s53_s30 }
  0x36   :  { %p348_p11 = scmp.lt.u32.totalorder %s344_s8, %s502_s3 }
  0x38   :  { %p350_p12 = pnand %p348_p11, %p345_p10 }
  0x3a   :  { %353 = shalt.err (!%p350_p12)
}
  0x3b   :  { %s354_s13 = scalar_lea.vmem %s54_s30, 16  ;;  %s358_s2 = scalar_lea.vmem %s54_s30, 32 }
  0x3c   :  { %p355_p13 = scmp.ne.s32.totalorder %s54_s30, %s354_s13  ;;  %p359_p0 = scmp.lt.s32.totalorder %s54_s30, %s54_s30 }
  0x3d   :  { %p360_p1 = scmp.lt.s32.totalorder %s358_s2, %s354_s13 }
  0x3f   :  { %p361_p2 = por %p360_p1, %p359_p0 }
  0x41   :  { %p362_p3 = pnand %p361_p2, %p355_p13 }
  0x43   :  { %365 = shalt.err (!%p362_p3)
}
  0x44   :  { %56 = dma.hbm_to_vmem [thread:$0]  %s502_s3, 16, %s54_s30, [#allocation10]  }
  0x45   :  { %388 = dma.done.wait [#allocation4], 32  }
  0x46   :  { %389 = vsyncadd [#allocation4], 4294967264 }
  0x47   :  { %390 = dma.done.wait [#allocation7], 2080  }
  0x48   :  { %391 = vsyncadd [#allocation7], 4294965216 }
  0x49   :  { %392 = dma.done.wait [#allocation10], 16  }
  0x4a   :  { %393 = vsyncadd [#allocation10], 4294967280  ;;  %v402_v0 = vmov 0.0|0.0   ;;  %vm403_vm0 = vmmov 0   ;;  %v404_v1 = vmov 0.0   ;;  %v72_v2 = vld [vmem:[#allocation8] sm:$0xff]  ;;  %v170_v33 = vstv %s503_s4 }
  0x4b   :  { %244 = vmatprep.subr.bf16.mxu0 %v402_v0  ;;  %241 = vmatprep.mubr.msk.f32.mxu0 %vm403_vm0, %v404_v1  ;;  %v73_v3 = vld [vmem:[#allocation8 + $0x8] sm:$0xff]  ;;  %v74_v4 = vld [vmem:[#allocation8 + $0x10] sm:$0xff]  ;;  %v75_v6 = vld [vmem:[#allocation8 + $0x18] sm:$0xff]  ;;  %s405_s16 = smov [#allocation11]  }
  0x4c   :  { %v245_v5 = vpack.c.bf16 %v73_v3, %v72_v2  ;;  %v248_v7 = vpack.c.bf16 %v75_v6, %v74_v4  ;;  %v76_v8 = vld [vmem:[#allocation8 + $0x20] sm:$0xff]  ;;  %v77_v9 = vld [vmem:[#allocation8 + $0x28] sm:$0xff]  ;;  %v78_v11 = vld [vmem:[#allocation8 + $0x30] sm:$0xff]  ;;  %s180_s17 = sshll.u32 %s405_s16, 4  ;;  %s181_s17 = int_to_ptr.vmem [resolvable:$true] %s180_s17 }
  0x4d   :  { %v251_v10 = vpack.c.bf16 %v77_v9, %v76_v8  ;;  %v79_v12 = vld [vmem:[#allocation8 + $0x38] sm:$0xff]  ;;  %v80_v14 = vld [vmem:[#allocation8 + $0x40] sm:$0xff]  ;;  %v81_v15 = vld [vmem:[#allocation8 + $0x48] sm:$0xff]  ;;  %s366_s18 = scalar_lea.vmem %s181_s17, 32  ;;  %p371_p5 = scmp.lt.s32.totalorder %s181_s17, %s181_s17 }
  0x4e   :  { %246 = vmatpush3.bf16.msra.mxu0 %v245_v5  ;;  %v254_v13 = vpack.c.bf16 %v79_v12, %v78_v11  ;;  %v257_v16 = vpack.c.bf16 %v81_v15, %v80_v14  ;;  %v82_v17 = vld [vmem:[#allocation8 + $0x50] sm:$0xff]  ;;  %v83_v18 = vld [vmem:[#allocation8 + $0x58] sm:$0xff]  ;;  %v84_v20 = vld [vmem:[#allocation8 + $0x60] sm:$0xff]  ;;  %p367_p4 = scmp.ne.s32.totalorder %s181_s17, %s366_s18  ;;  %p372_p6 = scmp.lt.s32.totalorder %s366_s18, %s366_s18 }
  0x4f   :  { %247 = vmatprep.subr.bf16.mxu0 %v402_v0  ;;  %v260_v19 = vpack.c.bf16 %v83_v18, %v82_v17  ;;  %v85_v21 = vld [vmem:[#allocation8 + $0x68] sm:$0xff]  ;;  %v86_v23 = vld [vmem:[#allocation8 + $0x70] sm:$0xff]  ;;  %v87_v24 = vld [vmem:[#allocation8 + $0x78] sm:$0xff] }
  0x50   :  { %v263_v22 = vpack.c.bf16 %v85_v21, %v84_v20  ;;  %v266_v25 = vpack.c.bf16 %v87_v24, %v86_v23  ;;  %v71_v26 = vld [vmem:[#allocation6] sm:$0x3]  ;;  %v158_v27 = vld [vmem:[#allocation3] sm:$0x3]  ;;  %v191_v29 = vld [vmem:[#allocation9] ss:$0 sm:$0xff]  ;;  %p373_p7 = por %p372_p6, %p371_p5 }
  0x52   :  { %249 = vmatpush3.bf16.msra.mxu0 %v248_v7  ;;  %p374_p8 = pnand %p373_p7, %p367_p4 }
  0x53   :  { %250 = vmatprep.subr.bf16.mxu0 %v402_v0 }
  0x56   :  { %252 = vmatpush3.bf16.msra.mxu0 %v251_v10 }
  0x57   :  { %253 = vmatprep.subr.bf16.mxu0 %v402_v0 }
  0x5a   :  { %255 = vmatpush3.bf16.msra.mxu0 %v254_v13 }
  0x5b   :  { %256 = vmatprep.subr.bf16.mxu0 %v402_v0 }
  0x5e   :  { %258 = vmatpush3.bf16.msra.mxu0 %v257_v16 }
  0x5f   :  { %259 = vmatprep.subr.bf16.mxu0 %v402_v0 }
  0x62   :  { %261 = vmatpush3.bf16.msra.mxu0 %v260_v19 }
  0x63   :  { %262 = vmatprep.subr.bf16.mxu0 %v402_v0 }
  0x66   :  { %264 = vmatpush3.bf16.msra.mxu0 %v263_v22 }
  0x67   :  { %265 = vmatprep.subr.bf16.mxu0 %v402_v0 }
  0x6a   :  { %267 = vmatpush3.bf16.msra.mxu0 %v266_v25 }
  0x6d   :  { %242 = vmatmul.mubr.f32.vlgmr.msra.gmra.mrb[0].mxu0 %v71_v26 }
 0x140   :  { %v154_v28 = vpop.f32.mrb[0].mxu0 }
 0x141   :  { %v159_v30 = vadd.f32 %v158_v27, %v154_v28  ;;  %v243_v31 = vpop.f32.mrb[1].mxu0 }
 0x143   :  { %v167_v32 = vadd.f32 %v191_v29, %v159_v30 }
 0x145   :  { %vm169_vm1 = vcmp.ge.f32.partialorder %v167_v32, 0.0 }
 0x146   :  { %v171_v34 = vsel %vm169_vm1, 1.0, %v170_v33 }
 0x147   :  { %v172_v35 = vmul.f32 %v171_v34, %v167_v32 }
 0x149   :  { %173 = vst [vmem:[#allocation11] sm:$0x3] %v172_v35 }
 0x14a   :  { %377 = shalt.err (!%p374_p8)
}
 0x14b   :  { %s378_s22 = scalar_lea.hbm %s504_s5, 32 }
 0x14c   :  { %p379_p9 = scmp.ne.s32.totalorder %s504_s5, %s378_s22  ;;  %p382_p10 = scmp.lt.u32.totalorder %s378_s22, %s504_s5 }
 0x14e   :  { %p384_p11 = pnand %p382_p10, %p379_p9 }
 0x150   :  { %387 = shalt.err (!%p384_p11)
}
 0x151   :  { %183 = dma.vmem_to_hbm [thread:$0]  %s181_s17, 32, %s504_s5, [#allocation5]  }
 0x152   :  { %394 = dma.done.wait [#allocation5], 32  }
 0x153   :  { %395 = vsyncadd [#allocation5], 4294967264 }
 0x154   :  { %187 = vsyncpa [#allocation4], 1 }
 0x155   :  { %188 = vsyncpa [#allocation7], 1 }
 0x156   :  { %189 = vsyncpa [#allocation10], 1 }
 0x157   :  { %190 = vsyncpa [#allocation5], 1 }

</bundles_post_ra>
